<compile_context>
chip_gen: v5e
topology: v5e:2x2
jax: 0.10.0
libtpu: 0.0.40
codegen_flags: <defaults>
</compile_context>

<pallas_src>
import math

import jax
import jax.numpy as jnp
from jax.experimental import pallas as pl
from jax.experimental.pallas import tpu as pltpu


def _copy_kernel(x_ref, o_ref):
    # Pure element copy of one lane-dense (block_rows, lanes) tile.
    o_ref[...] = x_ref[...]


def flatten_layer(x):
    """Pallas-free equivalent of FlattenLayer.forward: x.view(N, -1).

    Flatten on a contiguous row-major tensor is a pure metadata/layout op, so
    the fastest "kernel" on every TPU generation is no kernel at all.
    """
    return jnp.reshape(x, (x.shape[0], -1))


def flatten_layer_pallas(x, *, target_block_bytes=2 * 1024 * 1024):
    """FlattenLayer.forward as an explicit, materializing Pallas copy.

    Only useful when a physical copy of the flattened activations is actually
    required; otherwise prefer `flatten_layer` (free reshape).

    Tiling: the whole tensor is viewed as a (rows, lanes) slab with `lanes` a
    multiple of 128 (lane-dense, unmasked vst) and block sublane extent a
    multiple of 8 (or the full row extent), sized to ~`target_block_bytes`
    per block so double-buffered in+out stays inside scoped VMEM on
    v5e / v6e / v7x.
    """
    n = x.shape[0]
    f = math.prod(x.shape[1:]) if len(x.shape) > 1 else 1
    total = n * f
    itemsize = jnp.dtype(x.dtype).itemsize

    # Pick the widest lane extent (multiple of 128) that divides the total
    # element count: lane-dense output is the biggest single lever for a copy.
    lanes = None
    for cand in (4096, 2048, 1024, 512, 256, 128):
        if total % cand == 0:
            lanes = cand
            break

    if lanes is None:
        # Total not a multiple of 128: copy the (n, f) array as one full block
        # (block == full array dims satisfies the (8,128) rule).
        # TODO(synk): for huge non-128-divisible inputs, pad/split instead of
        # a single whole-array block.
        x2d = jnp.reshape(x, (n, f))
        return pl.pallas_call(
            _copy_kernel,
            out_shape=jax.ShapeDtypeStruct((n, f), x.dtype),
            grid_spec=pltpu.PrefetchScalarGridSpec(
                num_scalar_prefetch=0,
                grid=(1,),
                in_specs=[pl.BlockSpec((n, f), lambda i: (0, 0))],
                out_specs=pl.BlockSpec((n, f), lambda i: (0, 0)),
            ),
        )(x2d)

    rows = total // lanes

    if rows % 8 == 0:
        # Largest multiple-of-8 divisor of `rows` within the VMEM budget.
        budget_rows = max(8, (target_block_bytes // (lanes * itemsize)) // 8 * 8)
        block_rows = 8
        br = min(rows, budget_rows)
        while br >= 8:
            if rows % br == 0:
                block_rows = br
                break
            br -= 8
    else:
        # Full sublane extent is always a legal block dim.
        block_rows = rows

    grid_steps = rows // block_rows
    x_slab = jnp.reshape(x, (rows, lanes))  # free, row-major collapse

    out_slab = pl.pallas_call(
        _copy_kernel,
        out_shape=jax.ShapeDtypeStruct((rows, lanes), x.dtype),
        grid_spec=pltpu.PrefetchScalarGridSpec(
            num_scalar_prefetch=0,
            grid=(grid_steps,),
            in_specs=[pl.BlockSpec((block_rows, lanes), lambda i: (i, 0))],
            out_specs=pl.BlockSpec((block_rows, lanes), lambda i: (i, 0)),
        ),
        compiler_params=pltpu.CompilerParams(
            dimension_semantics=("parallel",),  # shards across v7x's 2 TCs
        ),
    )(x_slab)

    # Free reshape back to the module's output shape (N, F).
    return jnp.reshape(out_slab, (n, f))


if __name__ == "__main__":
    key = jax.random.PRNGKey(0)
    # Small NCHW input consistent with a conv-net feature map.
    x = jax.random.normal(key, (2, 4, 16, 16), dtype=jnp.float32)
    ref = jnp.reshape(x, (x.shape[0], -1))

    # 1) Recommended path: zero-cost reshape (no kernel).
    out_fast = jax.block_until_ready(flatten_layer(x))
    assert out_fast.shape == (2, 4 * 16 * 16)
    assert out_fast.dtype == x.dtype
    assert bool(jnp.array_equal(out_fast, ref))

    # 2) Explicit Pallas copy path, lane-dense single-block tiling.
    out_pallas = jax.block_until_ready(flatten_layer_pallas(x))
    assert out_pallas.shape == (2, 4 * 16 * 16)
    assert out_pallas.dtype == x.dtype
    assert bool(jnp.array_equal(out_pallas, ref))

    # 3) Same copy path forced onto a multi-step parallel grid (exercises the
    #    (block_rows, lanes) tiling + grid pipelining with small blocks).
    out_tiled = jax.block_until_ready(
        flatten_layer_pallas(x, target_block_bytes=32 * 1024)
    )
    assert bool(jnp.array_equal(out_tiled, ref))

    print("KERNEL_OK")
</pallas_src>

<mosaic_0001>
module attributes {stable_mosaic.version = 11 : i64} {
  func.func @_copy_kernel(%arg0: i32, %arg1: memref<1x2048xf32, #tpu.memory_space<vmem>>, %arg2: memref<1x2048xf32, #tpu.memory_space<vmem>>) attributes {dimension_semantics = [#tpu.dimension_semantics<parallel>], iteration_bounds = array<i64: 1>, scalar_prefetch = 0 : i64, scratch_operands = 0 : i64, tpu.core_type = #tpu.core_type<tc>, window_params = [{transform_indices = @transform_0, window_bounds = array<i64: 1, 2048>}, {transform_indices = @transform_1, window_bounds = array<i64: 1, 2048>}]} {
    %c0 = arith.constant 0 : index
    %c0_0 = arith.constant 0 : index
    %0 = vector.load %arg1[%c0, %c0_0] : memref<1x2048xf32, #tpu.memory_space<vmem>>, vector<1x2048xf32>
    %c0_1 = arith.constant 0 : index
    %c0_2 = arith.constant 0 : index
    %1 = vector.load %arg2[%c0_1, %c0_2] : memref<1x2048xf32, #tpu.memory_space<vmem>>, vector<1x2048xf32>
    tpu.vector_store %arg2[%c0_1, %c0_2], %0 {strides = array<i32>} : memref<1x2048xf32, #tpu.memory_space<vmem>>, vector<1x2048xf32>,
    return
  }
  func.func @transform_0(%arg0: i32) -> (i32, i32) {
    %c0_i32 = arith.constant 0 : i32
    %c0_i32_0 = arith.constant 0 : i32
    return %arg0, %c0_i32 : i32, i32
  }
  func.func @transform_1(%arg0: i32) -> (i32, i32) {
    %c0_i32 = arith.constant 0 : i32
    %c0_i32_0 = arith.constant 0 : i32
    return %arg0, %c0_i32 : i32, i32
  }
}

</mosaic_0001>

<bundles_post_ra>
// kernel: tpu_custom_call.1
= control target key start
LH: loop header
LB: loop body
LE: loop exit
PB: predicated region body
PF: predicated region fallthrough
CT: control target
= control target key end

     0   :  { %6 = vsyncpa [#allocation3], 0  ;;  %s116_s0 = inlined_call_operand.hbm [shape: f32[1,2048], index: 0, kind: input, shape index: {}]   ;;  %s117_s1 = inlined_call_operand.hbm [shape: f32[1,2048], index: 1, kind: output, shape index: {}]  }
   0x1   :  { %7 = vsyncpa [#allocation4], 0  ;;  %s13_s8 = sshll.u32 %s116_s0, 4  ;;  %s98_s9 = smov [#allocation2]   ;;  %s14_s8 = int_to_ptr.hbm [resolvable:$true] %s13_s8 }
   0x2   :  { %s15_s10 = sshll.u32 %s98_s9, 4  ;;  %s16_s10 = int_to_ptr.vmem [resolvable:$true] %s15_s10 }
   0x3   :  { %18 = dma.hbm_to_vmem [thread:$0]  %s14_s8, 256, %s16_s10, [#allocation3]  }
   0x4   :  { %94 = dma.done.wait [#allocation3], 256  }
   0x5   :  { %95 = vsyncadd [#allocation3], 4294967040  ;;  %s99_s11 = smov [#allocation5]   ;;  %s34_s15 = sshll.u32 %s117_s1, 4  ;;  %v23_v0 = vld [vmem:[#allocation2] sm:$0xff]  ;;  %v24_v1 = vld [vmem:[#allocation2 + $0x8] sm:$0xff]  ;;  %s35_s15 = int_to_ptr.hbm [resolvable:$true] %s34_s15 }
   0x6   :  { %s32_s12 = sshll.u32 %s99_s11, 4  ;;  %25 = vst [vmem:[#allocation5] sm:$0xff] %v23_v0  ;;  %s33_s12 = int_to_ptr.vmem [resolvable:$true] %s32_s12 }
   0x7   :  { %26 = vst [vmem:[#allocation5 + $0x8] sm:$0xff] %v24_v1 }
   0x8   :  { %37 = dma.vmem_to_hbm [thread:$0]  %s33_s12, 256, %s35_s15, [#allocation4]  }
   0x9   :  { %96 = dma.done.wait [#allocation4], 256  }
   0xa   :  { %97 = vsyncadd [#allocation4], 4294967040 }
   0xb   :  { %42 = vsyncpa [#allocation3], 1 }
   0xc   :  { %43 = vsyncpa [#allocation4], 1 }

</bundles_post_ra>
